<compile_context>
chip_gen: v6e
topology: v6e:2x2x1
jax: 0.10.0
libtpu: 0.0.40
codegen_flags: <defaults>
</compile_context>

<pallas_src>
import jax
import jax.numpy as jnp
import numpy as np
from jax.experimental import pallas as pl

# ---------------- model dims (small, consistent with the module) ------------
B = 16            # batch
OBS = 16          # observation dim
STATE = 32        # representation output ('state') dim
HID = 64          # hidden_size[0] for DuelQhead -> each branch uses HID // 2
BRANCH = HID // 2 # 32
A = 6             # action_space.n

# ---------------- packed weight slab layout (rows 8-aligned) ----------------
ROW_WR = 0                      # Wr   : (OBS,       STATE )  rows   0..15, cols 0:32
ROW_WH = 16                     # Wh   : (STATE,  2*BRANCH )  rows  16..47, cols 0:64
ROW_WO = 48                     # Wo   : (2*BRANCH,   1+A  )  rows  48..111, cols 0:7
ROW_BR = 112                    # br   : (1, STATE)           row  112
ROW_BH = 113                    # bh   : (1, 2*BRANCH)        row  113
ROW_BO = 114                    # bo   : (1, 1+A)             row  114
SLAB_ROWS = 120                 # padded to a multiple of 8
SLAB_COLS = 128                 # one lane-tile wide

# ---------------- merged output layout --------------------------------------
OUT_W = 128                     # lane-dense output width
COL_STATE = 0                   # cols 0..31   : state
COL_Q = STATE                   # cols 32..37  : Q values
COL_ARGMAX = STATE + A          # col  38      : argmax (as f32, exact small int)
PAD_W = OUT_W - (STATE + A + 1)


def duel_q_kernel(obs_ref, w_ref, out_ref):
    obs = obs_ref[...]                                              # (B, OBS)

    # --- representation: Linear + ReLU -> 'state' --------------------------
    wr = w_ref[ROW_WR:ROW_WR + OBS, 0:STATE]                        # (OBS, STATE)
    br = w_ref[ROW_BR:ROW_BR + 1, 0:STATE]                          # (1, STATE)
    state = jnp.maximum(
        jnp.dot(obs, wr, preferred_element_type=jnp.float32) + br, 0.0)

    # --- fused value/advantage hidden layer (one MXU push) -----------------
    wh = w_ref[ROW_WH:ROW_WH + STATE, 0:2 * BRANCH]                 # (STATE, 2*BRANCH)
    bh = w_ref[ROW_BH:ROW_BH + 1, 0:2 * BRANCH]                     # (1, 2*BRANCH)
    h = jnp.maximum(
        jnp.dot(state, wh, preferred_element_type=jnp.float32) + bh, 0.0)

    # --- fused output projection: [v | a] in one matmul ---------------------
    wo = w_ref[ROW_WO:ROW_WO + 2 * BRANCH, 0:1 + A]                 # (2*BRANCH, 1+A)
    bo = w_ref[ROW_BO:ROW_BO + 1, 0:1 + A]                          # (1, 1+A)
    va = jnp.dot(h, wo, preferred_element_type=jnp.float32) + bo    # (B, 1+A)
    v = va[:, 0:1]                                                  # (B, 1)
    a = va[:, 1:1 + A]                                              # (B, A)

    # --- dueling aggregation: Q = v + (a - mean(a)) -------------------------
    q = v + (a - jnp.mean(a, axis=-1, keepdims=True))               # (B, A)

    # --- greedy action: first index achieving the max (torch.argmax) -------
    # NOTE: assumes finite Q (a NaN row would emit the out-of-range sentinel
    # A, whereas torch.argmax treats NaN as maximal).
    m = jnp.max(q, axis=-1, keepdims=True)
    idx = jax.lax.broadcasted_iota(jnp.int32, q.shape, 1)
    sentinel = jnp.int32(A)
    argmax = jnp.min(jnp.where(q == m, idx, sentinel),
                     axis=-1, keepdims=True)                        # (B, 1) int32
    argmax_f = argmax.astype(jnp.float32)                           # exact (values < 2^24)

    # --- single lane-dense store of all results -----------------------------
    pad = jnp.zeros((B, PAD_W), jnp.float32)
    out_ref[...] = jnp.concatenate([state, q, argmax_f, pad], axis=-1)


def pack_params(params):
    """Host-side ONE-TIME packing of every weight/bias into a single slab.

    Call this once when parameters are loaded/updated and cache the result;
    it must NOT run on every forward call.
    """
    (wr, br, wv1, bv1, wv2, bv2, wa1, ba1, wa2, ba2) = params
    # fused hidden stage: [Wv1 | Wa1], [bv1 | ba1]
    wh = jnp.concatenate([wv1, wa1], axis=1)                        # (STATE, 2*BRANCH)
    bh = jnp.concatenate([bv1, ba1], axis=1)                        # (1, 2*BRANCH)
    # fused output stage: blockdiag(Wv2, Wa2), [bv2 | ba2]
    wo = jnp.zeros((2 * BRANCH, 1 + A), jnp.float32)
    wo = wo.at[:BRANCH, 0:1].set(wv2)                               # value column
    wo = wo.at[BRANCH:, 1:1 + A].set(wa2)                           # advantage columns
    bo = jnp.concatenate([bv2, ba2], axis=1)                        # (1, 1+A)

    slab = jnp.zeros((SLAB_ROWS, SLAB_COLS), jnp.float32)
    slab = slab.at[ROW_WR:ROW_WR + OBS, 0:STATE].set(wr)
    slab = slab.at[ROW_WH:ROW_WH + STATE, 0:2 * BRANCH].set(wh)
    slab = slab.at[ROW_WO:ROW_WO + 2 * BRANCH, 0:1 + A].set(wo)
    slab = slab.at[ROW_BR:ROW_BR + 1, 0:STATE].set(br)
    slab = slab.at[ROW_BH:ROW_BH + 1, 0:2 * BRANCH].set(bh)
    slab = slab.at[ROW_BO:ROW_BO + 1, 0:1 + A].set(bo)
    return slab


# Advisory cost hint so XLA can overlap this tiny custom call with neighbors.
_FLOPS = 2 * (B * OBS * STATE + B * STATE * 2 * BRANCH + B * 2 * BRANCH * (1 + A))
_BYTES = (B * OBS + SLAB_ROWS * SLAB_COLS + B * OUT_W) * 4


@jax.jit
def duel_qnetwork_forward(obs, slab):
    """Forward pass. `slab` is the cached result of pack_params(params)."""
    out = pl.pallas_call(
        duel_q_kernel,
        out_shape=jax.ShapeDtypeStruct((B, OUT_W), jnp.float32),
        cost_estimate=pl.CostEstimate(
            flops=_FLOPS, transcendentals=0, bytes_accessed=_BYTES),
    )(obs, slab)

    state = out[:, COL_STATE:COL_STATE + STATE]
    q = out[:, COL_Q:COL_Q + A]
    argmax = out[:, COL_ARGMAX].astype(jnp.int32)
    # Mirror torch module outputs: (outputs, argmax_action, evalQ)
    return {"state": state}, argmax, q


def init_params(key):
    ks = jax.random.split(key, 10)
    s = 0.1
    wr = jax.random.normal(ks[0], (OBS, STATE), jnp.float32) * s
    br = jax.random.normal(ks[1], (1, STATE), jnp.float32) * s
    wv1 = jax.random.normal(ks[2], (STATE, BRANCH), jnp.float32) * s
    bv1 = jax.random.normal(ks[3], (1, BRANCH), jnp.float32) * s
    wv2 = jax.random.normal(ks[4], (BRANCH, 1), jnp.float32) * s
    bv2 = jax.random.normal(ks[5], (1, 1), jnp.float32) * s
    wa1 = jax.random.normal(ks[6], (STATE, BRANCH), jnp.float32) * s
    ba1 = jax.random.normal(ks[7], (1, BRANCH), jnp.float32) * s
    wa2 = jax.random.normal(ks[8], (BRANCH, A), jnp.float32) * s
    ba2 = jax.random.normal(ks[9], (1, A), jnp.float32) * s
    return (wr, br, wv1, bv1, wv2, bv2, wa1, ba1, wa2, ba2)


def reference_forward(obs, params):
    (wr, br, wv1, bv1, wv2, bv2, wa1, ba1, wa2, ba2) = params
    state = jnp.maximum(obs @ wr + br, 0.0)
    v = jnp.maximum(state @ wv1 + bv1, 0.0) @ wv2 + bv2
    a = jnp.maximum(state @ wa1 + ba1, 0.0) @ wa2 + ba2
    q = v + (a - jnp.mean(a, axis=-1, keepdims=True))
    return state, jnp.argmax(q, axis=-1).astype(jnp.int32), q


if __name__ == "__main__":
    key = jax.random.PRNGKey(0)
    k_obs, k_par = jax.random.split(key)
    obs = jax.random.normal(k_obs, (B, OBS), jnp.float32)
    params = init_params(k_par)

    # One-time, cached packing (parameter-load time, NOT per inference call).
    slab = jax.block_until_ready(pack_params(params))

    outputs, argmax_action, evalQ = duel_qnetwork_forward(obs, slab)
    jax.block_until_ready((outputs["state"], argmax_action, evalQ))

    # sanity check against pure-JAX reference
    ref_state, ref_argmax, ref_q = reference_forward(obs, params)
    np.testing.assert_allclose(np.asarray(outputs["state"]), np.asarray(ref_state),
                               rtol=1e-3, atol=1e-3)
    np.testing.assert_allclose(np.asarray(evalQ), np.asarray(ref_q),
                               rtol=1e-3, atol=1e-3)
    np.testing.assert_array_equal(np.asarray(argmax_action), np.asarray(ref_argmax))

    print("KERNEL_OK")
</pallas_src>

<mosaic_0001>
module attributes {stable_mosaic.version = 11 : i64} {
  func.func @duel_q_kernel(%arg0: memref<16x16xf32, #tpu.memory_space<vmem>>, %arg1: memref<120x128xf32, #tpu.memory_space<vmem>>, %arg2: memref<16x128xf32, #tpu.memory_space<vmem>>) attributes {dimension_semantics = [], scalar_prefetch = 0 : i64, scratch_operands = 0 : i64, tpu.core_type = #tpu.core_type<tc>} {
    %c0 = arith.constant 0 : index
    %c0_0 = arith.constant 0 : index
    %0 = vector.load %arg0[%c0, %c0_0] : memref<16x16xf32, #tpu.memory_space<vmem>>, vector<16x16xf32>
    %c0_1 = arith.constant 0 : index
    %c0_2 = arith.constant 0 : index
    %1 = vector.load %arg1[%c0_1, %c0_2] : memref<120x128xf32, #tpu.memory_space<vmem>>, vector<16x32xf32>
    %c112 = arith.constant 112 : index
    %c0_3 = arith.constant 0 : index
    %2 = vector.load %arg1[%c112, %c0_3] : memref<120x128xf32, #tpu.memory_space<vmem>>, vector<1x32xf32>
    %cst = arith.constant dense<0.000000e+00> : vector<16x32xf32>
    %3 = tpu.matmul %0, %1, %cst {dimension_numbers = #tpu.dot_dimension_numbers<[1], [0], [0], [1], [0, 0, 1, 1], [], []>} : vector<16x16xf32>, vector<16x32xf32>, vector<16x32xf32> -> vector<16x32xf32>
    %4 = vector.broadcast %2 : vector<1x32xf32> to vector<16x32xf32>
    %5 = arith.addf %3, %4 : vector<16x32xf32>
    %cst_4 = arith.constant 0.000000e+00 : f32
    %6 = vector.broadcast %cst_4 : f32 to vector<16x32xf32>
    %7 = arith.maximumf %5, %6 : vector<16x32xf32>
    %c16 = arith.constant 16 : index
    %c0_5 = arith.constant 0 : index
    %8 = vector.load %arg1[%c16, %c0_5] : memref<120x128xf32, #tpu.memory_space<vmem>>, vector<32x64xf32>
    %c113 = arith.constant 113 : index
    %c0_6 = arith.constant 0 : index
    %9 = vector.load %arg1[%c113, %c0_6] : memref<120x128xf32, #tpu.memory_space<vmem>>, vector<1x64xf32>
    %cst_7 = arith.constant dense<0.000000e+00> : vector<16x64xf32>
    %10 = tpu.matmul %7, %8, %cst_7 {dimension_numbers = #tpu.dot_dimension_numbers<[1], [0], [0], [1], [0, 0, 1, 1], [], []>} : vector<16x32xf32>, vector<32x64xf32>, vector<16x64xf32> -> vector<16x64xf32>
    %11 = vector.broadcast %9 : vector<1x64xf32> to vector<16x64xf32>
    %12 = arith.addf %10, %11 : vector<16x64xf32>
    %cst_8 = arith.constant 0.000000e+00 : f32
    %13 = vector.broadcast %cst_8 : f32 to vector<16x64xf32>
    %14 = arith.maximumf %12, %13 : vector<16x64xf32>
    %c48 = arith.constant 48 : index
    %c0_9 = arith.constant 0 : index
    %15 = vector.load %arg1[%c48, %c0_9] : memref<120x128xf32, #tpu.memory_space<vmem>>, vector<64x7xf32>
    %c114 = arith.constant 114 : index
    %c0_10 = arith.constant 0 : index
    %16 = vector.load %arg1[%c114, %c0_10] : memref<120x128xf32, #tpu.memory_space<vmem>>, vector<1x7xf32>
    %cst_11 = arith.constant dense<0.000000e+00> : vector<16x7xf32>
    %17 = tpu.matmul %14, %15, %cst_11 {dimension_numbers = #tpu.dot_dimension_numbers<[1], [0], [0], [1], [0, 0, 1, 1], [], []>} : vector<16x64xf32>, vector<64x7xf32>, vector<16x7xf32> -> vector<16x7xf32>
    %18 = vector.broadcast %16 : vector<1x7xf32> to vector<16x7xf32>
    %19 = arith.addf %17, %18 : vector<16x7xf32>
    %20 = vector.extract_strided_slice %19 {offsets = [0, 0], sizes = [16, 1], strides = [1, 1]} : vector<16x7xf32> to vector<16x1xf32>
    %21 = vector.extract_strided_slice %19 {offsets = [0, 1], sizes = [16, 6], strides = [1, 1]} : vector<16x7xf32> to vector<16x6xf32>
    %cst_12 = arith.constant dense<0.000000e+00> : vector<16xf32>
    %22 = vector.multi_reduction <add>, %21, %cst_12 [1] : vector<16x6xf32> to vector<16xf32>
    %23 = vector.shape_cast %22 : vector<16xf32> to vector<16x1xf32>
    %cst_13 = arith.constant 6.000000e+00 : f32
    %24 = vector.broadcast %cst_13 : f32 to vector<16x1xf32>
    %25 = arith.divf %23, %24 : vector<16x1xf32>
    %26 = vector.broadcast %25 : vector<16x1xf32> to vector<16x6xf32>
    %27 = arith.subf %21, %26 : vector<16x6xf32>
    %28 = vector.broadcast %20 : vector<16x1xf32> to vector<16x6xf32>
    %29 = arith.addf %28, %27 : vector<16x6xf32>
    %cst_14 = arith.constant dense<0xFF800000> : vector<16xf32>
    %30 = vector.multi_reduction <maximumf>, %29, %cst_14 [1] : vector<16x6xf32> to vector<16xf32>
    %31 = vector.shape_cast %30 : vector<16xf32> to vector<16x1xf32>
    %32 = tpu.iota {dimensions = array<i32: 1>} : vector<16x6xi32>
    %33 = vector.broadcast %31 : vector<16x1xf32> to vector<16x6xf32>
    %34 = arith.cmpf oeq, %29, %33 : vector<16x6xf32>
    %c6_i32 = arith.constant 6 : i32
    %35 = vector.broadcast %c6_i32 : i32 to vector<16x6xi32>
    %36 = arith.select %34, %32, %35 : vector<16x6xi1>, vector<16x6xi32>
    %cst_15 = arith.constant dense<2147483647> : vector<16xi32>
    %37 = vector.multi_reduction <minsi>, %36, %cst_15 [1] : vector<16x6xi32> to vector<16xi32>
    %38 = vector.shape_cast %37 : vector<16xi32> to vector<16x1xi32>
    %39 = arith.sitofp %38 : vector<16x1xi32> to vector<16x1xf32>
    %cst_16 = arith.constant 0.000000e+00 : f32
    %40 = vector.broadcast %cst_16 : f32 to vector<16x89xf32>
    %41 = tpu.concatenate %7, %29, %39, %40 in 1 : vector<16x32xf32>, vector<16x6xf32>, vector<16x1xf32>, vector<16x89xf32> -> vector<16x128xf32>
    %c0_17 = arith.constant 0 : index
    %c0_18 = arith.constant 0 : index
    %42 = vector.load %arg2[%c0_17, %c0_18] : memref<16x128xf32, #tpu.memory_space<vmem>>, vector<16x128xf32>
    tpu.vector_store %arg2[%c0_17, %c0_18], %41 {strides = array<i32>} : memref<16x128xf32, #tpu.memory_space<vmem>>, vector<16x128xf32>,
    return
  }
}

</mosaic_0001>

<bundles_post_ra>
// kernel: duel_qnetwork_forward.1
= control target key start
LH: loop header
LB: loop body
LE: loop exit
PB: predicated region body
PF: predicated region fallthrough
CT: control target
= control target key end

     0   :  { %7 = vsyncpa [#allocation3], 0  ;;  %s598_s0 = inlined_call_operand.hbm [shape: f32[16,16], index: 0, kind: input, shape index: {}]   ;;  %s599_s1 = inlined_call_operand.hbm [shape: f32[120,128], index: 1, kind: input, shape index: {}]   ;;  %s600_s2 = inlined_call_operand.vmem [shape: f32[16,128], index: 2, kind: output, shape index: {}]  }
   0x1   :  { %8 = vsyncpa [#allocation5], 0  ;;  %s541_s9 = smov [#allocation2]  }
   0x2   :  { %s14_s10 = sshll.u32 %s541_s9, 4  ;;  %s15_s10 = int_to_ptr.vmem [resolvable:$true] %s14_s10 }
   0x3   :  { %s505_s11 = scalar_lea.vmem %s15_s10, 256  ;;  %p510_p1 = scmp.lt.s32.totalorder %s15_s10, %s15_s10 }
   0x4   :  { %p506_p0 = scmp.ne.s32.totalorder %s15_s10, %s505_s11  ;;  %p511_p2 = scmp.lt.s32.totalorder %s505_s11, %s505_s11 }
   0x6   :  { %p512_p3 = por %p511_p2, %p510_p1 }
   0x8   :  { %p513_p4 = pnand %p512_p3, %p506_p0 }
   0xa   :  { %516 = shalt.err (!%p513_p4)
}
   0xb   :  { %s542_s12 = smov 128   ;;  %s543_s13 = smov 8  }
   0xc   :  { %20 = dma.hbm_to_vmem [thread:$0]  %s598_s0, 256, %s15_s10, [#allocation3], %s542_s12, %s542_s12, %s543_s13  }
   0xd   :  { %s544_s16 = smov [#allocation4]  }
   0xe   :  { %s26_s17 = sshll.u32 %s544_s16, 4  ;;  %s27_s17 = int_to_ptr.vmem [resolvable:$true] %s26_s17 }
   0xf   :  { %s525_s18 = scalar_lea.vmem %s27_s17, 1920  ;;  %p530_p6 = scmp.lt.s32.totalorder %s27_s17, %s27_s17 }
  0x10   :  { %p526_p5 = scmp.ne.s32.totalorder %s27_s17, %s525_s18  ;;  %p531_p7 = scmp.lt.s32.totalorder %s525_s18, %s525_s18 }
  0x12   :  { %p532_p8 = por %p531_p7, %p530_p6 }
  0x14   :  { %p533_p9 = pnand %p532_p8, %p526_p5 }
  0x16   :  { %536 = shalt.err (!%p533_p9)
}
  0x17   :  { %32 = dma.hbm_to_vmem [thread:$0]  %s599_s1, 1920, %s27_s17, [#allocation5], %s542_s12, %s542_s12, %s543_s13  }
  0x18   :  { %537 = dma.done.wait [#allocation3], 256  }
  0x19   :  { %538 = vsyncadd [#allocation3], 4294967040 }
  0x1a   :  { %539 = dma.done.wait [#allocation5], 1920  }
  0x1b   :  { %540 = vsyncadd [#allocation5], 4294965376  ;;  %vm48_vm0 = vcmask 130048   ;;  %v42_v0 = vld [vmem:[#allocation4 + $0x8] sm:$0xff]  ;;  %v41_v1 = vld [vmem:[#allocation4] sm:$0xff]  ;;  %vm141_vm1 = vcmask 261120   ;;  %v357_v52 = vlaneseq }
  0x1c   :  { %v39_v2 = vld [vmem:[#allocation2] sm:$0xff]  ;;  %450 = vmatprep.subr.mxu1 %v42_v0  ;;  %v40_v3 = vld [vmem:[#allocation2 + $0x8] sm:$0xff]  ;;  %v135_v4 = vld [vmem:[#allocation4 + $0x28] sm:$0xff]  ;;  %vm238_vm2 = vcmask 523264   ;;  %v545_v30 = vmov 0   ;;  %s546_s0 = smov 127  }
  0x1d   :  { %454 = vmatprep.mubr.msk.f32.mxu1 %vm48_vm0, %v39_v2  ;;  %451 = vmatpush3.msra.mxu1 %v42_v0  ;;  %v134_v5 = vld [vmem:[#allocation4 + $0x20] sm:$0xff]  ;;  %v133_v6 = vld [vmem:[#allocation4 + $0x18] sm:$0xff]  ;;  %v132_v7 = vld [vmem:[#allocation4 + $0x10] sm:$0xff]  ;;  %vm328_vm3 = vcmask 48128   ;;  %vm350_vm4 = vcmask 56328   ;;  %v358_v53 = vand.u32 127, %v357_v52 }
  0x1e   :  { %452 = vmatprep.subr.mxu1 %v41_v1  ;;  %v232_v8 = vld [vmem:[#allocation4 + $0x68] sm:$0xff]  ;;  %v231_v9 = vld [vmem:[#allocation4 + $0x60] sm:$0xff]  ;;  %v230_v10 = vld [vmem:[#allocation4 + $0x58] sm:$0xff]  ;;  %495 = vset.pattern.permute.xlu0 %v545_v30  ;;  %s547_s1 = smov 1   ;;  %s548_s21 = smov 31   ;;  %vm407_vm9 = vcmask 310272  }
  0x1f   :  { %453 = vmatpush3.msra.mxu1 %v41_v1  ;;  %468 = vmatprep.subr.mxu0 %v232_v8  ;;  %v229_v11 = vld [vmem:[#allocation4 + $0x50] sm:$0xff]  ;;  %v228_v19 = vld [vmem:[#allocation4 + $0x48] sm:$0xff]  ;;  %v227_v20 = vld [vmem:[#allocation4 + $0x40] sm:$0xff]  ;;  %vm410_vm10 = vcmask 318464  }
  0x20   :  { %455 = vmatmul.mubr.msk.f32.vlgmr.msra.gmra.mxu1 %vm48_vm0, %v40_v3  ;;  %457 = vmatprep.subr.mxu1 %v135_v4  ;;  %v421_v12 = vld [vmem:[#allocation4 + $0x70] ss:$0 sm:$0xff]  ;;  %v226_v21 = vld [vmem:[#allocation4 + $0x38] sm:$0xff]  ;;  %v424_v23 = vld [vmem:[#allocation4 + $0x71] ss:$0 sm:$0xff] }
  0x21   :  { %458 = vmatpush3.msra.mxu1 %v135_v4  ;;  %469 = vmatpush3.msra.mxu0 %v232_v8  ;;  %v225_v22 = vld [vmem:[#allocation4 + $0x30] sm:$0xff] }
  0x22   :  { %459 = vmatprep.subr.mxu1 %v134_v5  ;;  %470 = vmatprep.subr.mxu0 %v231_v9  ;;  %v427_v32 = vld [vmem:[#allocation4 + $0x72] ss:$0 sm:$0xff] }
  0x23   :  { %460 = vmatpush3.msra.mxu1 %v134_v5  ;;  %471 = vmatpush3.msra.mxu0 %v231_v9 }
  0x24   :  { %461 = vmatprep.subr.mxu1 %v133_v6  ;;  %472 = vmatprep.subr.mxu0 %v230_v10 }
  0x25   :  { %462 = vmatpush3.msra.mxu1 %v133_v6  ;;  %473 = vmatpush3.msra.mxu0 %v230_v10 }
  0x26   :  { %463 = vmatprep.subr.mxu1 %v132_v7  ;;  %474 = vmatprep.subr.mxu0 %v229_v11 }
  0x27   :  { %464 = vmatpush3.msra.mxu1 %v132_v7  ;;  %475 = vmatpush3.msra.mxu0 %v229_v11 }
  0x28   :  { %476 = vmatprep.subr.mxu0 %v228_v19  ;;  %496 = vset.pattern.permute.xlu1 %v545_v30 }
  0x29   :  { %477 = vmatpush3.msra.mxu0 %v228_v19 }
  0x2a   :  { %478 = vmatprep.subr.mxu0 %v227_v20 }
  0x2b   :  { %479 = vmatpush3.msra.mxu0 %v227_v20 }
  0x2c   :  { %480 = vmatprep.subr.mxu0 %v226_v21 }
  0x2d   :  { %481 = vmatpush3.msra.mxu0 %v226_v21 }
  0x2e   :  { %482 = vmatprep.subr.mxu0 %v225_v22 }
  0x2f   :  { %483 = vmatpush3.msra.mxu0 %v225_v22 }
  0xe0   :  { %v456_v13 = vpop.f32.mrf.mxu1 }
  0xe1   :  { %v570_v14 = vadd.f32 %v456_v13, %v421_v12 }
  0xe2   :  { %v121_v15 = vpop.f32.mrf.mxu1 }
  0xe3   :  { %v572_v16 = vadd.f32 %v421_v12, %v121_v15  ;;  %v131_v18 = vmax.f32 %v570_v14, 0.0 }
  0xe5   :  { %v130_v17 = vmax.f32 %v572_v16, 0.0 }
  0xe7   :  { %465 = vmatprep.mubr.msk.f32.mxu1 %vm141_vm1, %v130_v17 }
  0xe8   :  { %466 = vmatmul.mubr.msk.f32.vlgmr.msra.gmra.mxu1 %vm141_vm1, %v131_v18 }
 0x1a8   :  { %v467_v24 = vpop.f32.mrf.mxu1 }
 0x1a9   :  { %v220_v25 = vadd.f32 %v467_v24, %v424_v23 }
 0x1aa   :  { %v214_v26 = vpop.f32.mrf.mxu1 }
 0x1ab   :  { %v215_v27 = vadd.f32 %v424_v23, %v214_v26  ;;  %v224_v29 = vmax.f32 %v220_v25, 0.0 }
 0x1ad   :  { %v223_v28 = vmax.f32 %v215_v27, 0.0 }
 0x1af   :  { %484 = vmatprep.mubr.msk.f32.mxu0 %vm238_vm2, %v223_v28 }
 0x1b0   :  { %485 = vmatmul.mubr.msk.f32.vlgmr.msra.gmra.mxu0 %vm238_vm2, %v224_v29 }
 0x270   :  { %v486_v31 = vpop.f32.mrf.mxu0 }
 0x271   :  { %v317_v35 = vadd.f32 %v486_v31, %v427_v32 }
 0x272   :  { %v311_v33 = vpop.f32.mrf.mxu0 }
 0x273   :  { %v312_v34 = vadd.f32 %v427_v32, %v311_v33 }
 0x275   :  { %322 = vrot.lane.b32.xlu0 %v312_v34, %s546_s0 }
 0x279   :  { %324 = vrot.lane.b32.xlu0 %v317_v35, %s546_s0 }
 0x27d   :  { %341 = vperm.xlu0 %495, %v312_v34  }
 0x2e7   :  { %v323_v36 = vpop.permute.xlu0 %322 }
 0x2e8   :  { %v329_v39 = vsel %vm328_vm3, %v323_v36, 0.0 }
 0x2eb   :  { %v325_v37 = vpop.permute.xlu0 %324 }
 0x2ec   :  { %v332_v38 = vsel %vm328_vm3, %v325_v37, 0.0 }
 0x2ed   :  { %333 = vadd.xlane.f32.xlu1 %v332_v38 }
 0x2f1   :  { %330 = vadd.xlane.f32.xlu1 %v329_v39 }
 0x2f8   :  { %v342_v46 = vpop.permute.xlu0 %341 }
 0x302   :  { %345 = vperm.xlu1 %496, %v317_v35  }
 0x376   :  { %v334_v40 = vpop.xlane.xlu1 %333 }
 0x377   :  { %v337_v41 = vmul.f32 0.16666667, %v334_v40 }
 0x379   :  { %v339_v45 = vsub.f32 %v317_v35, %v337_v41 }
 0x37a   :  { %v331_v42 = vpop.xlane.xlu1 %330 }
 0x37b   :  { %v336_v43 = vmul.f32 0.16666667, %v331_v42 }
 0x37d   :  { %v338_v44 = vsub.f32 %v312_v34, %v336_v43 }
 0x37e   :  { %v346_v47 = vpop.permute.xlu1 %345 }
 0x37f   :  { %v348_v48 = vadd.f32 %v342_v46, %v338_v44  ;;  %v349_v49 = vadd.f32 %v346_v47, %v339_v45 }
 0x381   :  { %v354_v50 = vsel %vm350_vm4, %v349_v49, -inf  ;;  %v351_v51 = vsel %vm350_vm4, %v348_v48, -inf }
 0x382   :  { %355 = vmax.xlane.f32.xlu1 %v354_v50  ;;  %352 = vmax.xlane.f32.xlu0 %v351_v51 }
 0x398   :  { %361 = vrot.lane.b32.xlu0 %v358_v53, %s547_s1 }
 0x40b   :  { %v353_v54 = vpop.xlane.xlu0 %352  ;;  %v356_v55 = vpop.xlane.xlu1 %355 }
 0x40c   :  { %vm360_vm5 = vcmp.eq.f32.partialorder %v349_v49, %v356_v55  ;;  %vm359_vm6 = vcmp.eq.f32.partialorder %v348_v48, %v353_v54 }
 0x40f   :  { %v362_v56 = vpop.permute.xlu0 %361 }
 0x410   :  { %v363_v57 = vsel %vm359_vm6, %v362_v56, 6  ;;  %v364_v58 = vsel %vm360_vm5, %v362_v56, 6 }
 0x411   :  { %v365_v59 = vsel %vm350_vm4, %v363_v57, 2147483647  ;;  %v380_v60 = vsel %vm350_vm4, %v364_v58, 2147483647 }
 0x412   :  { %v367_v61 = vshra.s32 %v365_v59, 16  ;;  %v382_v63 = vshra.s32 %v380_v60, 16  ;;  %v366_v1 = vand.u32 65535, %v365_v59  ;;  %v381_v4 = vand.u32 65535, %v380_v60 }
 0x414   :  { %v369_v62 = vcvt.s32.f32 %v367_v61  ;;  %v384_v0 = vcvt.s32.f32 %v382_v63  ;;  %v368_v3 = vcvt.s32.f32 %v366_v1  ;;  %v383_v7 = vcvt.s32.f32 %v381_v4 }
 0x416   :  { %370 = vmin.xlane.f32.xlu1 %v369_v62 }
 0x41a   :  { %385 = vmin.xlane.f32.xlu1 %v384_v0 }
 0x49f   :  { %v371_v2 = vpop.xlane.xlu1 %370 }
 0x4a0   :  { %vm372_vm7 = vcmp.eq.f32.partialorder %v369_v62, %v371_v2  ;;  %v377_v9 = vcvt.f32.s32 %v371_v2 }
 0x4a1   :  { %v373_v5 = vsel %vm372_vm7, %v368_v3, inf }
 0x4a2   :  { %374 = vmin.xlane.f32.xlu0 %v373_v5  ;;  %v378_v12 = vshll.u32 %v377_v9, 16 }
 0x4a3   :  { %v386_v6 = vpop.xlane.xlu1 %385 }
 0x4a4   :  { %vm387_vm8 = vcmp.eq.f32.partialorder %v384_v0, %v386_v6  ;;  %v392_v13 = vcvt.f32.s32 %v386_v6 }
 0x4a5   :  { %v388_v8 = vsel %vm387_vm8, %v383_v7, inf }
 0x4a6   :  { %389 = vmin.xlane.f32.xlu1 %v388_v8  ;;  %v393_v21 = vshll.u32 %v392_v13, 16 }
 0x4b7   :  { %399 = vrot.lane.b32.xlu1 %v348_v48, %s548_s21 }
 0x4bb   :  { %401 = vrot.lane.b32.xlu1 %v349_v49, %s548_s21 }
 0x52b   :  { %v375_v10 = vpop.xlane.xlu0 %374 }
 0x52c   :  { %v376_v11 = vcvt.f32.s32 %v375_v10 }
 0x52e   :  { %v379_v15 = vadd.s32 %v378_v12, %v376_v11 }
 0x52f   :  { %v390_v19 = vpop.xlane.xlu1 %389 }
 0x530   :  { %v391_v20 = vcvt.f32.s32 %v390_v19  ;;  %v395_v22 = vcvt.s32.f32 %v379_v15 }
 0x532   :  { %v394_v23 = vadd.s32 %v393_v21, %v391_v20 }
 0x533   :  { %v400_v24 = vpop.permute.xlu1 %399 }
 0x534   :  { %v405_v25 = vsel %vm141_vm1, %v130_v17, %v400_v24  ;;  %v396_v28 = vcvt.s32.f32 %v394_v23 }
 0x535   :  { %v408_v26 = vsel %vm407_vm9, %v405_v25, %v395_v22 }
 0x536   :  { %v411_v27 = vsel %vm410_vm10, %v408_v26, 0.0 }
 0x537   :  { %413 = vst [vmem:[%s600_s2] sm:$0xff] %v411_v27  ;;  %v402_v29 = vpop.permute.xlu1 %401 }
 0x538   :  { %v406_v30 = vsel %vm141_vm1, %v131_v18, %v402_v29 }
 0x539   :  { %v409_v31 = vsel %vm407_vm9, %v406_v30, %v396_v28 }
 0x53a   :  { %v412_v32 = vsel %vm410_vm10, %v409_v31, 0.0 }
 0x53b   :  { %414 = vst [vmem:[%s600_s2 + $0x8] sm:$0xff] %v412_v32 }
 0x53c   :  { %419 = vsyncpa [#allocation3], 1 }
 0x53d   :  { %420 = vsyncpa [#allocation5], 1 }

</bundles_post_ra>
